<compile_context>
chip_gen: v7x
topology: tpu7x:2x2x1
jax: 0.10.0
libtpu: 0.0.40
codegen_flags: <defaults>
</compile_context>

<pallas_src>
import functools

import jax
import jax.numpy as jnp
from jax import lax
from jax.experimental import pallas as pl
from jax.experimental.pallas import tpu as pltpu


def _tcn_kernel(*args, layer_cfg, K, bt, L):
    """Fused TCN forward for one batch tile laid out as a (C, bt*L) slab.

    args = (x_ref, *param_refs, o_ref)
    layer_cfg: tuple of (c_in, c_out, dilation, has_downsample) per layer.
    """
    x_ref = args[0]
    o_ref = args[-1]
    param_refs = args[1:-1]

    BL = bt * L
    # Per-segment time index (position within each length-L batch segment).
    col_mod = lax.broadcasted_iota(jnp.int32, (1, BL), 1) % L

    def taps(ab, dil):
        """Build the (K*C, BL) shifted-tap stack for one dilated causal conv.

        ab is bf16 (C, BL); tap i is ab shifted right by (K-1-i)*dil with
        zero fill, applied independently per length-L batch segment.
        """
        cols = []
        for i in range(K):
            s = (K - 1 - i) * dil
            if s == 0:
                cols.append(ab)
            elif s >= L:
                cols.append(jnp.zeros_like(ab))
            else:
                shifted = jnp.concatenate(
                    [jnp.zeros((ab.shape[0], s), ab.dtype), ab[:, :BL - s]],
                    axis=1)
                if bt > 1:
                    # Zero positions whose source would cross a batch boundary.
                    shifted = jnp.where(col_mod >= s, shifted,
                                        jnp.zeros_like(shifted))
                cols.append(shifted)
        return jnp.concatenate(cols, axis=0)

    a = x_ref[...].astype(jnp.float32)                    # (C0, BL) f32
    r = 0
    for (_c_in, _c_out, dil, has_ds) in layer_cfg:
        w1 = param_refs[r]; b1 = param_refs[r + 1]
        w2 = param_refs[r + 2]; b2 = param_refs[r + 3]
        r += 4
        if has_ds:
            wd = param_refs[r]; bd = param_refs[r + 1]
            r += 2

        ab = a.astype(jnp.bfloat16)

        # ---- conv1: one MXU contraction over K*C_in for the whole tile ----
        h = jnp.dot(w1[...], taps(ab, dil),
                    preferred_element_type=jnp.float32)
        h = jnp.maximum(h + b1[...], 0.0)                 # bias + ReLU epilogue
        # TODO(synk): dropout treated as identity (inference / eval mode).

        # ---- conv2: one MXU contraction over K*C_out ----
        h2 = jnp.dot(w2[...], taps(h.astype(jnp.bfloat16), dil),
                     preferred_element_type=jnp.float32)
        h2 = jnp.maximum(h2 + b2[...], 0.0)

        # ---- residual branch + final ReLU ----
        if has_ds:
            res = jnp.dot(wd[...], ab,
                          preferred_element_type=jnp.float32) + bd[...]
        else:
            res = a
        a = jnp.maximum(h2 + res, 0.0)

    o_ref[...] = a.astype(o_ref.dtype)


def _pick_batch_tile(n, L, max_lanes=2048):
    """Largest batch tile bt dividing n such that the lane width bt*L is
    either a multiple of 128 or covers the full N*L extent, within a cap."""
    divs = [d for d in range(1, n + 1) if n % d == 0]
    cands = [d for d in divs if d == n or (d * L) % 128 == 0]
    ok = [d for d in cands if d * L <= max_lanes]
    if ok:
        return max(ok)
    return min(cands)


def _const_index_map(ndim):
    def im(n):
        return (0,) * ndim
    return im


def temporal_conv_net(x, params, kernel_size):
    """Fused TCN forward: all TemporalBlocks in one pallas_call."""
    N, C0, L = x.shape
    K = kernel_size

    layer_cfg = []
    flat_params = []
    c_in = C0
    for i, (w1, b1, w2, b2, wd, bd) in enumerate(params):
        c_out = w1.shape[0]
        dil = 2 ** i
        has_ds = wd is not None
        layer_cfg.append((c_in, c_out, dil, has_ds))
        # Flatten OIK weights to (C_out, K*C_in) matching the tap-stack order,
        # and cast matmul operands to bf16 (accumulation stays f32 in-kernel).
        w1f = jnp.transpose(w1, (0, 2, 1)).reshape(c_out, K * c_in)
        w2f = jnp.transpose(w2, (0, 2, 1)).reshape(c_out, K * c_out)
        flat_params += [w1f.astype(jnp.bfloat16), b1.astype(jnp.float32),
                        w2f.astype(jnp.bfloat16), b2.astype(jnp.float32)]
        if has_ds:
            flat_params += [wd.astype(jnp.bfloat16), bd.astype(jnp.float32)]
        c_in = c_out
    c_last = c_in
    layer_cfg = tuple(layer_cfg)

    bt = _pick_batch_tile(N, L)
    BL = bt * L
    grid = (N // bt,)

    # Lane-dense slab layout: column j <-> (batch j // L, time j % L).
    x2 = jnp.transpose(x, (1, 0, 2)).reshape(C0, N * L)

    kernel = functools.partial(_tcn_kernel, layer_cfg=layer_cfg, K=K,
                               bt=bt, L=L)

    in_specs = [pl.BlockSpec((C0, BL), lambda n: (0, n))]
    in_specs += [pl.BlockSpec(p.shape, _const_index_map(p.ndim))
                 for p in flat_params]

    out2 = pl.pallas_call(
        kernel,
        out_shape=jax.ShapeDtypeStruct((c_last, N * L), x.dtype),
        grid=grid,
        in_specs=in_specs,
        out_specs=pl.BlockSpec((c_last, BL), lambda n: (0, n)),
        compiler_params=pltpu.CompilerParams(
            dimension_semantics=("parallel",)),
    )(x2, *flat_params)

    # Undo the layout plumbing: (C_last, N*L) -> (N, C_last, L).
    return jnp.transpose(out2.reshape(c_last, N, L), (1, 0, 2))


# -------------------- deterministic parameter construction --------------------

def _weightnorm_conv(key, c_out, c_in, k, sigma=100.0):
    kv, kg, kb = jax.random.split(key, 3)
    # weight_norm reparametrization: W = g * v / ||v||  (norm over all dims but 0)
    v = sigma * jax.random.normal(kv, (c_out, c_in, k), jnp.float32)
    g = jax.random.uniform(kg, (c_out, 1, 1), jnp.float32, minval=0.5, maxval=1.5)
    norm = jnp.sqrt(jnp.sum(v * v, axis=(1, 2), keepdims=True))
    w = g * v / norm
    b = 0.1 * jax.random.normal(kb, (c_out, 1), jnp.float32)
    return w, b


def init_tcn_params(key, num_inputs, num_channels, kernel_size):
    params = []
    c_in = num_inputs
    for c_out in num_channels:
        key, k1, k2, k3, k4 = jax.random.split(key, 5)
        w1, b1 = _weightnorm_conv(k1, c_out, c_in, kernel_size)
        w2, b2 = _weightnorm_conv(k2, c_out, c_out, kernel_size)
        if c_in != c_out:
            wd = 0.5 * jax.random.normal(k3, (c_out, c_in), jnp.float32)
            bd = 0.1 * jax.random.normal(k4, (c_out, 1), jnp.float32)
        else:
            wd, bd = None, None
        params.append((w1, b1, w2, b2, wd, bd))
        c_in = c_out
    return params


# -------------------- pure-JAX reference (for validation) --------------------

def _ref_block(x, w1, b1, w2, b2, wd, bd, K, dil):
    pad = (K - 1) * dil

    def conv(inp, w, b):
        y = lax.conv_general_dilated(
            inp, w, window_strides=(1,), padding=[(pad, pad)],
            rhs_dilation=(dil,), dimension_numbers=('NCH', 'OIH', 'NCH'))
        if pad > 0:
            y = y[:, :, :-pad]                 # Chomp1d
        return y + b[None, :, :]

    h = jnp.maximum(conv(x, w1, b1), 0.0)
    h = jnp.maximum(conv(h, w2, b2), 0.0)
    if wd is not None:
        res = jnp.einsum('oc,ncl->nol', wd, x) + bd[None, :, :]
    else:
        res = x
    return jnp.maximum(h + res, 0.0)


def _ref_tcn(x, params, kernel_size):
    for i, (w1, b1, w2, b2, wd, bd) in enumerate(params):
        x = _ref_block(x, w1, b1, w2, b2, wd, bd, kernel_size, 2 ** i)
    return x


if __name__ == "__main__":
    key = jax.random.PRNGKey(0)
    kx, kp = jax.random.split(key)

    N, num_inputs, L = 2, 4, 16
    num_channels = [8, 8]
    kernel_size = 2

    x = jax.random.normal(kx, (N, num_inputs, L), jnp.float32)
    params = init_tcn_params(kp, num_inputs, num_channels, kernel_size)

    out = jax.block_until_ready(temporal_conv_net(x, params, kernel_size))
    ref = jax.block_until_ready(_ref_tcn(x, params, kernel_size))

    assert out.shape == (N, num_channels[-1], L)
    err = float(jnp.max(jnp.abs(out.astype(jnp.float32) - ref)))
    scale = float(jnp.max(jnp.abs(ref))) + 1e-6
    # bf16 matmul operands vs f32 reference -> allow ~1-2% relative error.
    assert err / scale < 5e-2, f"mismatch vs reference: rel err {err / scale:.4f}"

    print("KERNEL_OK")
</pallas_src>

<mosaic_0001>
module attributes {stable_mosaic.version = 11 : i64} {
  func.func @_tcn_kernel(%arg0: i32, %arg1: memref<4x32xf32, #tpu.memory_space<vmem>>, %arg2: memref<8x8xbf16, #tpu.memory_space<vmem>>, %arg3: memref<8x1xf32, #tpu.memory_space<vmem>>, %arg4: memref<8x16xbf16, #tpu.memory_space<vmem>>, %arg5: memref<8x1xf32, #tpu.memory_space<vmem>>, %arg6: memref<8x4xbf16, #tpu.memory_space<vmem>>, %arg7: memref<8x1xf32, #tpu.memory_space<vmem>>, %arg8: memref<8x16xbf16, #tpu.memory_space<vmem>>, %arg9: memref<8x1xf32, #tpu.memory_space<vmem>>, %arg10: memref<8x16xbf16, #tpu.memory_space<vmem>>, %arg11: memref<8x1xf32, #tpu.memory_space<vmem>>, %arg12: memref<8x32xf32, #tpu.memory_space<vmem>>) attributes {dimension_semantics = [#tpu.dimension_semantics<parallel>], iteration_bounds = array<i64: 1>, scalar_prefetch = 0 : i64, scratch_operands = 0 : i64, tpu.core_type = #tpu.core_type<tc>, window_params = [{transform_indices = @transform_0, window_bounds = array<i64: 4, 32>}, {pipeline_mode = #tpu.pipeline_mode<synchronous>, transform_indices = @transform_1, window_bounds = array<i64: 8, 8>}, {pipeline_mode = #tpu.pipeline_mode<synchronous>, transform_indices = @transform_2, window_bounds = array<i64: 8, 1>}, {pipeline_mode = #tpu.pipeline_mode<synchronous>, transform_indices = @transform_3, window_bounds = array<i64: 8, 16>}, {pipeline_mode = #tpu.pipeline_mode<synchronous>, transform_indices = @transform_4, window_bounds = array<i64: 8, 1>}, {pipeline_mode = #tpu.pipeline_mode<synchronous>, transform_indices = @transform_5, window_bounds = array<i64: 8, 4>}, {pipeline_mode = #tpu.pipeline_mode<synchronous>, transform_indices = @transform_6, window_bounds = array<i64: 8, 1>}, {pipeline_mode = #tpu.pipeline_mode<synchronous>, transform_indices = @transform_7, window_bounds = array<i64: 8, 16>}, {pipeline_mode = #tpu.pipeline_mode<synchronous>, transform_indices = @transform_8, window_bounds = array<i64: 8, 1>}, {pipeline_mode = #tpu.pipeline_mode<synchronous>, transform_indices = @transform_9, window_bounds = array<i64: 8, 16>}, {pipeline_mode = #tpu.pipeline_mode<synchronous>, transform_indices = @transform_10, window_bounds = array<i64: 8, 1>}, {transform_indices = @transform_11, window_bounds = array<i64: 8, 32>}]} {
    %0 = tpu.iota {dimensions = array<i32: 1>} : vector<1x32xi32>
    %c16_i32 = arith.constant 16 : i32
    %c0_i32 = arith.constant 0 : i32
    %1 = arith.cmpi eq, %c16_i32, %c0_i32 : i32
    %c1_i32 = arith.constant 1 : i32
    %2 = arith.select %1, %c1_i32, %c16_i32 : i32
    %3 = vector.broadcast %2 : i32 to vector<1x32xi32>
    %4 = arith.remsi %0, %3 : vector<1x32xi32>
    %c0_i32_0 = arith.constant 0 : i32
    %5 = vector.broadcast %c0_i32_0 : i32 to vector<1x32xi32>
    %6 = arith.cmpi ne, %4, %5 : vector<1x32xi32>
    %c0_i32_1 = arith.constant 0 : i32
    %7 = vector.broadcast %c0_i32_1 : i32 to vector<1x32xi32>
    %8 = arith.cmpi slt, %4, %7 : vector<1x32xi32>
    %c0_i32_2 = arith.constant 0 : i32
    %9 = arith.cmpi slt, %2, %c0_i32_2 : i32
    %10 = vector.broadcast %9 : i1 to vector<1x32xi1>
    %11 = vector.broadcast %10 : vector<1x32xi1> to vector<1x32xi1>
    %12 = arith.xori %8, %11 : vector<1x32xi1>
    %13 = arith.andi %12, %6 : vector<1x32xi1>
    %14 = vector.broadcast %2 : i32 to vector<1x32xi32>
    %15 = arith.addi %4, %14 : vector<1x32xi32>
    %16 = arith.select %13, %15, %4 : vector<1x32xi1>, vector<1x32xi32>
    %c0 = arith.constant 0 : index
    %c0_3 = arith.constant 0 : index
    %17 = vector.load %arg1[%c0, %c0_3] : memref<4x32xf32, #tpu.memory_space<vmem>>, vector<4x32xf32>
    %18 = arith.truncf %17 : vector<4x32xf32> to vector<4x32xbf16>
    %c0_4 = arith.constant 0 : index
    %c0_5 = arith.constant 0 : index
    %19 = vector.load %arg2[%c0_4, %c0_5] : memref<8x8xbf16, #tpu.memory_space<vmem>>, vector<8x8xbf16>
    %cst = arith.constant 0.000000e+00 : bf16
    %20 = vector.broadcast %cst : bf16 to vector<4x1xbf16>
    %21 = vector.extract_strided_slice %18 {offsets = [0, 0], sizes = [4, 31], strides = [1, 1]} : vector<4x32xbf16> to vector<4x31xbf16>
    %22 = tpu.concatenate %20, %21 in 1 : vector<4x1xbf16>, vector<4x31xbf16> -> vector<4x32xbf16>
    %c1_i32_6 = arith.constant 1 : i32
    %23 = vector.broadcast %c1_i32_6 : i32 to vector<1x32xi32>
    %24 = arith.cmpi sge, %16, %23 : vector<1x32xi32>
    %cst_7 = arith.constant 0.000000e+00 : bf16
    %25 = vector.broadcast %cst_7 : bf16 to vector<4x32xbf16>
    %26 = vector.shape_cast %24 : vector<1x32xi1> to vector<1x32xi1>
    %27 = vector.broadcast %26 : vector<1x32xi1> to vector<4x32xi1>
    %28 = arith.select %27, %22, %25 : vector<4x32xi1>, vector<4x32xbf16>
    %29 = tpu.concatenate %28, %18 in 0 : vector<4x32xbf16>, vector<4x32xbf16> -> vector<8x32xbf16>
    %cst_8 = arith.constant dense<0.000000e+00> : vector<8x32xf32>
    %30 = tpu.matmul %19, %29, %cst_8 {dimension_numbers = #tpu.dot_dimension_numbers<[1], [0], [0], [1], [0, 0, 1, 1], [], []>} : vector<8x8xbf16>, vector<8x32xbf16>, vector<8x32xf32> -> vector<8x32xf32>
    %c0_9 = arith.constant 0 : index
    %c0_10 = arith.constant 0 : index
    %31 = vector.load %arg3[%c0_9, %c0_10] : memref<8x1xf32, #tpu.memory_space<vmem>>, vector<8x1xf32>
    %32 = vector.broadcast %31 : vector<8x1xf32> to vector<8x32xf32>
    %33 = arith.addf %30, %32 : vector<8x32xf32>
    %cst_11 = arith.constant 0.000000e+00 : f32
    %34 = vector.broadcast %cst_11 : f32 to vector<8x32xf32>
    %35 = arith.maximumf %33, %34 : vector<8x32xf32>
    %c0_12 = arith.constant 0 : index
    %c0_13 = arith.constant 0 : index
    %36 = vector.load %arg4[%c0_12, %c0_13] : memref<8x16xbf16, #tpu.memory_space<vmem>>, vector<8x16xbf16>
    %37 = arith.truncf %35 : vector<8x32xf32> to vector<8x32xbf16>
    %cst_14 = arith.constant 0.000000e+00 : bf16
    %38 = vector.broadcast %cst_14 : bf16 to vector<8x1xbf16>
    %39 = vector.extract_strided_slice %37 {offsets = [0, 0], sizes = [8, 31], strides = [1, 1]} : vector<8x32xbf16> to vector<8x31xbf16>
    %40 = tpu.concatenate %38, %39 in 1 : vector<8x1xbf16>, vector<8x31xbf16> -> vector<8x32xbf16>
    %c1_i32_15 = arith.constant 1 : i32
    %41 = vector.broadcast %c1_i32_15 : i32 to vector<1x32xi32>
    %42 = arith.cmpi sge, %16, %41 : vector<1x32xi32>
    %cst_16 = arith.constant 0.000000e+00 : bf16
    %43 = vector.broadcast %cst_16 : bf16 to vector<8x32xbf16>
    %44 = vector.shape_cast %42 : vector<1x32xi1> to vector<1x32xi1>
    %45 = vector.broadcast %44 : vector<1x32xi1> to vector<8x32xi1>
    %46 = arith.select %45, %40, %43 : vector<8x32xi1>, vector<8x32xbf16>
    %47 = tpu.concatenate %46, %37 in 0 : vector<8x32xbf16>, vector<8x32xbf16> -> vector<16x32xbf16>
    %cst_17 = arith.constant dense<0.000000e+00> : vector<8x32xf32>
    %48 = tpu.matmul %36, %47, %cst_17 {dimension_numbers = #tpu.dot_dimension_numbers<[1], [0], [0], [1], [0, 0, 1, 1], [], []>} : vector<8x16xbf16>, vector<16x32xbf16>, vector<8x32xf32> -> vector<8x32xf32>
    %c0_18 = arith.constant 0 : index
    %c0_19 = arith.constant 0 : index
    %49 = vector.load %arg5[%c0_18, %c0_19] : memref<8x1xf32, #tpu.memory_space<vmem>>, vector<8x1xf32>
    %50 = vector.broadcast %49 : vector<8x1xf32> to vector<8x32xf32>
    %51 = arith.addf %48, %50 : vector<8x32xf32>
    %cst_20 = arith.constant 0.000000e+00 : f32
    %52 = vector.broadcast %cst_20 : f32 to vector<8x32xf32>
    %53 = arith.maximumf %51, %52 : vector<8x32xf32>
    %c0_21 = arith.constant 0 : index
    %c0_22 = arith.constant 0 : index
    %54 = vector.load %arg6[%c0_21, %c0_22] : memref<8x4xbf16, #tpu.memory_space<vmem>>, vector<8x4xbf16>
    %cst_23 = arith.constant dense<0.000000e+00> : vector<8x32xf32>
    %55 = tpu.matmul %54, %18, %cst_23 {dimension_numbers = #tpu.dot_dimension_numbers<[1], [0], [0], [1], [0, 0, 1, 1], [], []>} : vector<8x4xbf16>, vector<4x32xbf16>, vector<8x32xf32> -> vector<8x32xf32>
    %c0_24 = arith.constant 0 : index
    %c0_25 = arith.constant 0 : index
    %56 = vector.load %arg7[%c0_24, %c0_25] : memref<8x1xf32, #tpu.memory_space<vmem>>, vector<8x1xf32>
    %57 = vector.broadcast %56 : vector<8x1xf32> to vector<8x32xf32>
    %58 = arith.addf %55, %57 : vector<8x32xf32>
    %59 = arith.addf %53, %58 : vector<8x32xf32>
    %cst_26 = arith.constant 0.000000e+00 : f32
    %60 = vector.broadcast %cst_26 : f32 to vector<8x32xf32>
    %61 = arith.maximumf %59, %60 : vector<8x32xf32>
    %62 = arith.truncf %61 : vector<8x32xf32> to vector<8x32xbf16>
    %c0_27 = arith.constant 0 : index
    %c0_28 = arith.constant 0 : index
    %63 = vector.load %arg8[%c0_27, %c0_28] : memref<8x16xbf16, #tpu.memory_space<vmem>>, vector<8x16xbf16>
    %cst_29 = arith.constant 0.000000e+00 : bf16
    %64 = vector.broadcast %cst_29 : bf16 to vector<8x2xbf16>
    %65 = vector.extract_strided_slice %62 {offsets = [0, 0], sizes = [8, 30], strides = [1, 1]} : vector<8x32xbf16> to vector<8x30xbf16>
    %66 = tpu.concatenate %64, %65 in 1 : vector<8x2xbf16>, vector<8x30xbf16> -> vector<8x32xbf16>
    %c2_i32 = arith.constant 2 : i32
    %67 = vector.broadcast %c2_i32 : i32 to vector<1x32xi32>
    %68 = arith.cmpi sge, %16, %67 : vector<1x32xi32>
    %cst_30 = arith.constant 0.000000e+00 : bf16
    %69 = vector.broadcast %cst_30 : bf16 to vector<8x32xbf16>
    %70 = vector.shape_cast %68 : vector<1x32xi1> to vector<1x32xi1>
    %71 = vector.broadcast %70 : vector<1x32xi1> to vector<8x32xi1>
    %72 = arith.select %71, %66, %69 : vector<8x32xi1>, vector<8x32xbf16>
    %73 = tpu.concatenate %72, %62 in 0 : vector<8x32xbf16>, vector<8x32xbf16> -> vector<16x32xbf16>
    %cst_31 = arith.constant dense<0.000000e+00> : vector<8x32xf32>
    %74 = tpu.matmul %63, %73, %cst_31 {dimension_numbers = #tpu.dot_dimension_numbers<[1], [0], [0], [1], [0, 0, 1, 1], [], []>} : vector<8x16xbf16>, vector<16x32xbf16>, vector<8x32xf32> -> vector<8x32xf32>
    %c0_32 = arith.constant 0 : index
    %c0_33 = arith.constant 0 : index
    %75 = vector.load %arg9[%c0_32, %c0_33] : memref<8x1xf32, #tpu.memory_space<vmem>>, vector<8x1xf32>
    %76 = vector.broadcast %75 : vector<8x1xf32> to vector<8x32xf32>
    %77 = arith.addf %74, %76 : vector<8x32xf32>
    %cst_34 = arith.constant 0.000000e+00 : f32
    %78 = vector.broadcast %cst_34 : f32 to vector<8x32xf32>
    %79 = arith.maximumf %77, %78 : vector<8x32xf32>
    %c0_35 = arith.constant 0 : index
    %c0_36 = arith.constant 0 : index
    %80 = vector.load %arg10[%c0_35, %c0_36] : memref<8x16xbf16, #tpu.memory_space<vmem>>, vector<8x16xbf16>
    %81 = arith.truncf %79 : vector<8x32xf32> to vector<8x32xbf16>
    %cst_37 = arith.constant 0.000000e+00 : bf16
    %82 = vector.broadcast %cst_37 : bf16 to vector<8x2xbf16>
    %83 = vector.extract_strided_slice %81 {offsets = [0, 0], sizes = [8, 30], strides = [1, 1]} : vector<8x32xbf16> to vector<8x30xbf16>
    %84 = tpu.concatenate %82, %83 in 1 : vector<8x2xbf16>, vector<8x30xbf16> -> vector<8x32xbf16>
    %c2_i32_38 = arith.constant 2 : i32
    %85 = vector.broadcast %c2_i32_38 : i32 to vector<1x32xi32>
    %86 = arith.cmpi sge, %16, %85 : vector<1x32xi32>
    %cst_39 = arith.constant 0.000000e+00 : bf16
    %87 = vector.broadcast %cst_39 : bf16 to vector<8x32xbf16>
    %88 = vector.shape_cast %86 : vector<1x32xi1> to vector<1x32xi1>
    %89 = vector.broadcast %88 : vector<1x32xi1> to vector<8x32xi1>
    %90 = arith.select %89, %84, %87 : vector<8x32xi1>, vector<8x32xbf16>
    %91 = tpu.concatenate %90, %81 in 0 : vector<8x32xbf16>, vector<8x32xbf16> -> vector<16x32xbf16>
    %cst_40 = arith.constant dense<0.000000e+00> : vector<8x32xf32>
    %92 = tpu.matmul %80, %91, %cst_40 {dimension_numbers = #tpu.dot_dimension_numbers<[1], [0], [0], [1], [0, 0, 1, 1], [], []>} : vector<8x16xbf16>, vector<16x32xbf16>, vector<8x32xf32> -> vector<8x32xf32>
    %c0_41 = arith.constant 0 : index
    %c0_42 = arith.constant 0 : index
    %93 = vector.load %arg11[%c0_41, %c0_42] : memref<8x1xf32, #tpu.memory_space<vmem>>, vector<8x1xf32>
    %94 = vector.broadcast %93 : vector<8x1xf32> to vector<8x32xf32>
    %95 = arith.addf %92, %94 : vector<8x32xf32>
    %cst_43 = arith.constant 0.000000e+00 : f32
    %96 = vector.broadcast %cst_43 : f32 to vector<8x32xf32>
    %97 = arith.maximumf %95, %96 : vector<8x32xf32>
    %98 = arith.addf %97, %61 : vector<8x32xf32>
    %cst_44 = arith.constant 0.000000e+00 : f32
    %99 = vector.broadcast %cst_44 : f32 to vector<8x32xf32>
    %100 = arith.maximumf %98, %99 : vector<8x32xf32>
    %c0_45 = arith.constant 0 : index
    %c0_46 = arith.constant 0 : index
    %101 = vector.load %arg12[%c0_45, %c0_46] : memref<8x32xf32, #tpu.memory_space<vmem>>, vector<8x32xf32>
    tpu.vector_store %arg12[%c0_45, %c0_46], %100 {strides = array<i32>} : memref<8x32xf32, #tpu.memory_space<vmem>>, vector<8x32xf32>,
    return
  }
  func.func @transform_0(%arg0: i32) -> (i32, i32) {
    %c0_i32 = arith.constant 0 : i32
    %c0_i32_0 = arith.constant 0 : i32
    return %c0_i32, %arg0 : i32, i32
  }
  func.func @transform_1(%arg0: i32) -> (i32, i32) {
    %c0_i32 = arith.constant 0 : i32
    %c0_i32_0 = arith.constant 0 : i32
    %c0_i32_1 = arith.constant 0 : i32
    return %c0_i32, %c0_i32_0 : i32, i32
  }
  func.func @transform_2(%arg0: i32) -> (i32, i32) {
    %c0_i32 = arith.constant 0 : i32
    %c0_i32_0 = arith.constant 0 : i32
    %c0_i32_1 = arith.constant 0 : i32
    return %c0_i32, %c0_i32_0 : i32, i32
  }
  func.func @transform_3(%arg0: i32) -> (i32, i32) {
    %c0_i32 = arith.constant 0 : i32
    %c0_i32_0 = arith.constant 0 : i32
    %c0_i32_1 = arith.constant 0 : i32
    return %c0_i32, %c0_i32_0 : i32, i32
  }
  func.func @transform_4(%arg0: i32) -> (i32, i32) {
    %c0_i32 = arith.constant 0 : i32
    %c0_i32_0 = arith.constant 0 : i32
    %c0_i32_1 = arith.constant 0 : i32
    return %c0_i32, %c0_i32_0 : i32, i32
  }
  func.func @transform_5(%arg0: i32) -> (i32, i32) {
    %c0_i32 = arith.constant 0 : i32
    %c0_i32_0 = arith.constant 0 : i32
    %c0_i32_1 = arith.constant 0 : i32
    return %c0_i32, %c0_i32_0 : i32, i32
  }
  func.func @transform_6(%arg0: i32) -> (i32, i32) {
    %c0_i32 = arith.constant 0 : i32
    %c0_i32_0 = arith.constant 0 : i32
    %c0_i32_1 = arith.constant 0 : i32
    return %c0_i32, %c0_i32_0 : i32, i32
  }
  func.func @transform_7(%arg0: i32) -> (i32, i32) {
    %c0_i32 = arith.constant 0 : i32
    %c0_i32_0 = arith.constant 0 : i32
    %c0_i32_1 = arith.constant 0 : i32
    return %c0_i32, %c0_i32_0 : i32, i32
  }
  func.func @transform_8(%arg0: i32) -> (i32, i32) {
    %c0_i32 = arith.constant 0 : i32
    %c0_i32_0 = arith.constant 0 : i32
    %c0_i32_1 = arith.constant 0 : i32
    return %c0_i32, %c0_i32_0 : i32, i32
  }
  func.func @transform_9(%arg0: i32) -> (i32, i32) {
    %c0_i32 = arith.constant 0 : i32
    %c0_i32_0 = arith.constant 0 : i32
    %c0_i32_1 = arith.constant 0 : i32
    return %c0_i32, %c0_i32_0 : i32, i32
  }
  func.func @transform_10(%arg0: i32) -> (i32, i32) {
    %c0_i32 = arith.constant 0 : i32
    %c0_i32_0 = arith.constant 0 : i32
    %c0_i32_1 = arith.constant 0 : i32
    return %c0_i32, %c0_i32_0 : i32, i32
  }
  func.func @transform_11(%arg0: i32) -> (i32, i32) {
    %c0_i32 = arith.constant 0 : i32
    %c0_i32_0 = arith.constant 0 : i32
    return %c0_i32, %arg0 : i32, i32
  }
}

</mosaic_0001>

<bundles_post_ra>
// kernel: tpu_custom_call.1
= control target key start
LH: loop header
LB: loop body
LE: loop exit
PB: predicated region body
PF: predicated region fallthrough
CT: control target
= control target key end

     0   :  { %v478_v2 = vmov 0.0   ;;  %vm479_vm0 = vmmov 0   ;;  %s658_s0 = inlined_call_operand.vmem [shape: f32[4,32], index: 0, kind: input, shape index: {}]   ;;  %s659_s1 = inlined_call_operand.vmem [shape: bf16[8,8], index: 1, kind: input, shape index: {}]   ;;  %s660_s2 = inlined_call_operand.vmem [shape: f32[8,1], index: 2, kind: input, shape index: {}]   ;;  %s661_s3 = inlined_call_operand.vmem [shape: bf16[8,16], index: 3, kind: input, shape index: {}]   ;;  %s662_s4 = inlined_call_operand.vmem [shape: f32[8,1], index: 4, kind: input, shape index: {}]   ;;  %s663_s5 = inlined_call_operand.vmem [shape: bf16[8,4], index: 5, kind: input, shape index: {}]   ;;  %s664_s6 = inlined_call_operand.vmem [shape: f32[8,1], index: 6, kind: input, shape index: {}]   ;;  %s665_s7 = inlined_call_operand.vmem [shape: bf16[8,16], index: 7, kind: input, shape index: {}]   ;;  %s666_s8 = inlined_call_operand.vmem [shape: f32[8,1], index: 8, kind: input, shape index: {}]   ;;  %s667_s9 = inlined_call_operand.vmem [shape: bf16[8,16], index: 9, kind: input, shape index: {}]   ;;  %s668_s10 = inlined_call_operand.vmem [shape: f32[8,1], index: 10, kind: input, shape index: {}]   ;;  %s669_s11 = inlined_call_operand.hbm [shape: f32[8,32], index: 11, kind: output, shape index: {}]  }
   0x1   :  { %v54_v0 = vld [vmem:[%s658_s0] sm:$0xf]  ;;  %416 = vmatprep.subr.bf16.mxu0 %v478_v2  ;;  %422 = vmatprep.subr.bf16.mxu1 %v478_v2 }
   0x2   :  { %v55_v1 = vpack.c.bf16 %v54_v0, %v54_v0  ;;  %418 = vmatprep.mubr.msk.bf16.mxu0 %vm479_vm0, %v478_v2  ;;  %424 = vmatprep.mubr.msk.bf16.mxu1 %vm479_vm0, %v478_v2 }
   0x3   :  { %16 = vsyncpa [#allocation3], 0  ;;  %s480_s19 = smov 1   ;;  %v481_v3 = vmov 0   ;;  %v75_v4 = vld [vmem:[%s660_s2] sm:$0xff]  ;;  %v40_v5 = vlaneseq  ;;  %vm60_vm2 = vcmask 7168  }
   0x4   :  { %58 = vrot.lane.b32.xlu0 %v55_v1, %s480_s19  ;;  %453 = vset.pattern.permute.xlu1 %v481_v3  ;;  %v70_v9 = vrot.slane %v55_v1, 6  ;;  %vm71_vm4 = vcmask 1041408   ;;  %vm85_vm5 = vcmask 1043456   ;;  %v56_v15 = vld [vmem:[%s659_s1] sm:$0xf]  ;;  %vm81_vm6 = vcmask 64512  }
   0x5   :  { %452 = vset.pattern.permute.xlu0 %v481_v3  ;;  %v557_v6 = vand.u32 127, %v40_v5  ;;  %v206_v16 = vsel %vm71_vm4, %v55_v1, 0  ;;  %v194_v17 = vld [vmem:[%s663_s5] sm:$0xf]  ;;  %vm201_vm7 = vcmask 31744   ;;  %vm149_vm8 = vcmask 130048  }
   0x6   :  { %v143_v26 = vld [vmem:[%s662_s4] sm:$0xff]  ;;  %vm255_vm10 = vcmask 15360   ;;  %s483_s12 = smov [#allocation2]   ;;  %vm385_vm12 = vcmask 261120  }
   0x7   :  { %v46_v7 = vand.u32 15, %v557_v6  ;;  %v195_v27 = vld [vmem:[%s664_s6] sm:$0xff]  ;;  %s393_s13 = sshll.u32 %s483_s12, 4  ;;  %s394_s13 = int_to_ptr.vmem [resolvable:$true] %s393_s13 }
   0x8   :  { %78 = vperm.xlu0 %452, %v75_v4   ;;  %v269_v28 = vld [vmem:[%s666_s8] sm:$0xff]  ;;  %s454_s14 = scalar_lea.vmem %s394_s13, 128  ;;  %p459_p1 = scmp.lt.s32.totalorder %s394_s13, %s394_s13 }
   0x9   :  { %vm562_vm1 = vcmp.ge.s32.totalorder %v46_v7, 1  ;;  %v333_v29 = vld [vmem:[%s668_s10] sm:$0xff]  ;;  %vm617_vm9 = vcmp.ge.s32.totalorder %v46_v7, 2  ;;  %p455_p0 = scmp.ne.s32.totalorder %s394_s13, %s454_s14  ;;  %p460_p2 = scmp.lt.s32.totalorder %s454_s14, %s454_s14 }
   0xa   :  { %vm68_vm3 = vmpackc.low %vm562_vm1, %vm562_vm1  ;;  %v129_v35 = vld [vmem:[%s661_s3] sm:$0xf]  ;;  %s482_s3 = smov 2  }
   0xb   :  { %vm262_vm11 = vmpackc.low %vm617_vm9, %vm617_vm9  ;;  %v251_v58 = vld [vmem:[%s665_s7] sm:$0xf]  ;;  %p461_p3 = por %p460_p2, %p459_p1 }
   0xc   :  { %v319_v8 = vld [vmem:[%s667_s9] sm:$0xf] }
   0xd   :  { %p462_p4 = pnand %p461_p3, %p455_p0 }
  0x76   :  { %v59_v10 = vpop.permute.xlu0 %58 }
  0x77   :  { %v63_v11 = vsel %vm60_vm2, 0, %v59_v10 }
  0x78   :  { %v69_v12 = vsel %vm68_vm3, %v63_v11, 0 }
  0x79   :  { %v74_v13 = vsel %vm71_vm4, %v69_v12, %v70_v9 }
  0x7a   :  { %v86_v14 = vsel %vm85_vm5, %v74_v13, 0 }
  0x7b   :  { %417 = vmatpush3.bf16.msra.mxu0 %v86_v14 }
  0x7c   :  { %428 = vmatprep.subr.bf16.mxu0 %v478_v2 }
  0x7e   :  { %419 = vmatmul.mubr.msk.bf16.vlgmr.msra.gmra.mrb[0].mxu0 %vm81_vm6, %v56_v15 }
  0x7f   :  { %430 = vmatprep.mubr.msk.bf16.mxu0 %vm479_vm0, %v478_v2  ;;  %429 = vmatpush3.bf16.msra.mxu0 %v206_v16 }
  0x80   :  { %440 = vmatprep.subr.bf16.mxu0 %v478_v2 }
  0x86   :  { %431 = vmatmul.mubr.msk.bf16.vlgmr.msra.gmra.mrb[4].mxu0 %vm201_vm7, %v194_v17 }
  0x87   :  { %v79_v18 = vpop.permute.xlu0 %78  ;;  %442 = vmatprep.mubr.msk.bf16.mxu0 %vm479_vm0, %v478_v2 }
 0x151   :  { %v122_v19 = vpop.f32.mrb[0].mxu0 }
 0x152   :  { %v123_v20 = vadd.f32 %v122_v19, %v79_v18  ;;  %v420_v21 = vpop.f32.mrb[1].mxu0 }
 0x153   :  { %v125_v22 = vpop.f32.mrb[2].mxu0 }
 0x154   :  { %v128_v23 = vmax.f32 %v123_v20, 0.0  ;;  %v421_v24 = vpop.f32.mrb[3].mxu0 }
 0x156   :  { %v130_v25 = vpack.c.bf16 %v128_v23, %v128_v23 }
 0x158   :  { %132 = vrot.lane.b32.xlu1 %v130_v25, %s480_s19  ;;  %v138_v31 = vrot.slane %v130_v25, 4 }
 0x159   :  { %v242_v36 = vpop.f32.mrb[4].mxu0 }
 0x15a   :  { %v432_v37 = vpop.f32.mrb[5].mxu0 }
 0x15b   :  { %v245_v38 = vpop.f32.mrb[6].mxu0 }
 0x15c   :  { %146 = vperm.xlu1 %453, %v143_v26   ;;  %v433_v39 = vpop.f32.mrb[7].mxu0 }
 0x160   :  { %198 = vperm.xlu1 %453, %v195_v27  }
 0x164   :  { %272 = vperm.xlu1 %453, %v269_v28  }
 0x168   :  { %336 = vperm.xlu1 %453, %v333_v29  }
 0x1ca   :  { %v133_v30 = vpop.permute.xlu1 %132 }
 0x1cb   :  { %v135_v32 = vsel %vm60_vm2, 0, %v133_v30 }
 0x1cc   :  { %v137_v33 = vsel %vm68_vm3, %v135_v32, 0 }
 0x1cd   :  { %v141_v34 = vsel %vm85_vm5, %v137_v33, %v138_v31 }
 0x1ce   :  { %423 = vmatpush3.bf16.msra.mxu1 %v141_v34 }
 0x1cf   :  { %434 = vmatprep.subr.bf16.mxu1 %v478_v2 }
 0x1d1   :  { %425 = vmatmul.mubr.msk.bf16.vlgmr.msra.gmra.mrb[0].mxu1 %vm149_vm8, %v129_v35 }
 0x1d2   :  { %436 = vmatprep.mubr.msk.bf16.mxu1 %vm479_vm0, %v478_v2 }
 0x1db   :  { %v147_v40 = vpop.permute.xlu1 %146 }
 0x1df   :  { %v199_v44 = vpop.permute.xlu1 %198 }
 0x1e0   :  { %v243_v46 = vadd.f32 %v242_v36, %v199_v44 }
 0x1e3   :  { %v273_v59 = vpop.permute.xlu1 %272 }
 0x1e7   :  { %v337_v9 = vpop.permute.xlu1 %336 }
 0x2a4   :  { %v187_v41 = vpop.f32.mrb[0].mxu1 }
 0x2a5   :  { %v188_v42 = vadd.f32 %v187_v41, %v147_v40  ;;  %v426_v43 = vpop.f32.mrb[1].mxu1 }
 0x2a6   :  { %v190_v45 = vpop.f32.mrb[2].mxu1 }
 0x2a7   :  { %v193_v47 = vmax.f32 %v188_v42, 0.0  ;;  %v427_v48 = vpop.f32.mrb[3].mxu1 }
 0x2a9   :  { %v248_v49 = vadd.f32 %v243_v46, %v193_v47 }
 0x2ab   :  { %v249_v50 = vmax.f32 %v248_v49, 0.0 }
 0x2ad   :  { %v250_v51 = vpack.c.bf16 %v249_v50, %v249_v50 }
 0x2af   :  { %253 = vrot.lane.b32.xlu0 %v250_v51, %s482_s3  ;;  %v264_v54 = vrot.slane %v250_v51, 4 }
 0x321   :  { %v254_v53 = vpop.permute.xlu0 %253 }
 0x322   :  { %v257_v55 = vsel %vm255_vm10, 0, %v254_v53 }
 0x323   :  { %v263_v56 = vsel %vm262_vm11, %v257_v55, 0 }
 0x324   :  { %v267_v57 = vsel %vm85_vm5, %v263_v56, %v264_v54 }
 0x325   :  { %435 = vmatpush3.bf16.msra.mxu1 %v267_v57 }
 0x328   :  { %437 = vmatmul.mubr.msk.bf16.vlgmr.msra.gmra.mrb[4].mxu1 %vm149_vm8, %v251_v58 }
 0x3fb   :  { %v312_v60 = vpop.f32.mrb[4].mxu1 }
 0x3fc   :  { %v313_v61 = vadd.f32 %v312_v60, %v273_v59  ;;  %v438_v62 = vpop.f32.mrb[5].mxu1 }
 0x3fd   :  { %v315_v63 = vpop.f32.mrb[6].mxu1 }
 0x3fe   :  { %v318_v0 = vmax.f32 %v313_v61, 0.0  ;;  %v439_v1 = vpop.f32.mrb[7].mxu1 }
 0x400   :  { %v320_v2 = vpack.c.bf16 %v318_v0, %v318_v0 }
 0x402   :  { %322 = vrot.lane.b32.xlu0 %v320_v2, %s482_s3  ;;  %v328_v4 = vrot.slane %v320_v2, 4 }
 0x474   :  { %v323_v3 = vpop.permute.xlu0 %322 }
 0x475   :  { %v325_v5 = vsel %vm255_vm10, 0, %v323_v3 }
 0x476   :  { %v327_v6 = vsel %vm262_vm11, %v325_v5, 0 }
 0x477   :  { %v331_v7 = vsel %vm85_vm5, %v327_v6, %v328_v4 }
 0x478   :  { %441 = vmatpush3.bf16.msra.mxu0 %v331_v7 }
 0x47b   :  { %443 = vmatmul.mubr.msk.bf16.vlgmr.msra.gmra.mrb[8].mxu0 %vm149_vm8, %v319_v8 }
 0x54e   :  { %v376_v10 = vpop.f32.mrb[8].mxu0 }
 0x54f   :  { %v377_v11 = vadd.f32 %v376_v10, %v337_v9  ;;  %v444_v12 = vpop.f32.mrb[9].mxu0 }
 0x550   :  { %v379_v13 = vpop.f32.mrb[10].mxu0 }
 0x551   :  { %v382_v14 = vmax.f32 %v377_v11, 0.0  ;;  %v445_v15 = vpop.f32.mrb[11].mxu0 }
 0x553   :  { %v383_v16 = vadd.f32 %v382_v14, %v249_v50 }
 0x555   :  { %v384_v17 = vmax.f32 %v383_v16, 0.0 }
 0x557   :  { %386 = vst.msk [vmem:[#allocation2] sm:$0xff] %vm385_vm12, %v384_v17 }
 0x558   :  { %465 = shalt.err (!%p462_p4)
}
 0x559   :  { %s466_s16 = scalar_lea.hbm %s669_s11, 128 }
 0x55a   :  { %p467_p5 = scmp.ne.s32.totalorder %s669_s11, %s466_s16  ;;  %p470_p6 = scmp.lt.u32.totalorder %s466_s16, %s669_s11 }
 0x55c   :  { %p472_p7 = pnand %p470_p6, %p467_p5 }
 0x55e   :  { %475 = shalt.err (!%p472_p7)
}
 0x55f   :  { %396 = dma.vmem_to_hbm [thread:$0]  %s394_s13, 128, %s669_s11, [#allocation3]  }
 0x560   :  { %476 = dma.done.wait [#allocation3], 128  }
 0x561   :  { %477 = vsyncadd [#allocation3], 4294967168 }
 0x562   :  { %400 = vsyncpa [#allocation3], 1 }

</bundles_post_ra>
